<compile_context>
chip_gen: v5e
topology: v5e:2x2
jax: 0.10.0
libtpu: 0.0.40
codegen_flags: <defaults>
</compile_context>

<pallas_src>
import functools

import numpy as np
import jax
import jax.numpy as jnp
from jax.experimental import pallas as pl
from jax.experimental.pallas import tpu as pltpu


def _causal_conv_kernel(x_ref, halo_ref, w_ref, b_ref, o_ref, xp_ref, col_ref):
    # x_ref   : (1, TT, Cin)       current time tile (input dtype)
    # halo_ref: (1, 1, LEAD, Cin)  LEAD = round_up(ps, 8); the last ps rows are
    #                              the causal halo (zeros for the first tile)
    # w_ref   : (ks*Cin, Hp)       im2col weights, H zero-padded to Hp (128-mult)
    # b_ref   : (1, Hp)            f32 bias (zero-padded)
    # o_ref   : (1, TT, H)         output tile (H is NOT padded)
    # xp_ref  : VMEM scratch (LEAD+TT, Cin)   [halo ; tile] slab, compute dtype
    # col_ref : VMEM scratch (TT, ks*Cin)     im2col LHS, compute dtype
    TT = o_ref.shape[1]
    H = o_ref.shape[2]
    LEAD = halo_ref.shape[2]
    Cin = x_ref.shape[2]
    ks = w_ref.shape[0] // Cin
    ps = ks - 1
    cdt = xp_ref.dtype

    # Assemble the slab; cast to compute dtype here (no wrapper pass over x).
    xp_ref[0:LEAD, :] = halo_ref[0, 0].astype(cdt)
    xp_ref[LEAD:LEAD + TT, :] = x_ref[0].astype(cdt)

    # im2col: column block k = slab rows shifted by k (ks is small & static ->
    # unrolled).  The shifted reads all come from the single aligned slab; if
    # profiling ever shows relayout copies here, they can be replaced with
    # pltpu.roll on the sublane axis (XLU slot).
    base = LEAD - ps
    for k in range(ks):
        col_ref[:, k * Cin:(k + 1) * Cin] = xp_ref[base + k:base + k + TT, :]

    # Single MXU matmul over K = ks*Cin with f32 accumulation (replaces ks
    # small-K dots chained with full (TT, Hp) f32 adds).
    acc = jnp.dot(col_ref[...], w_ref[...], preferred_element_type=jnp.float32)

    # f32 epilogue: bias + ReLU; drop the Hp padding and cast only at the store.
    acc = jnp.maximum(acc + b_ref[...], 0.0)
    o_ref[0] = acc[:, :H].astype(o_ref.dtype)


def _round_up(x, m):
    return ((x + m - 1) // m) * m


def _vmem_capacity_bytes():
    try:
        info = pltpu.get_tpu_info()
        cap = getattr(info, "vmem_capacity_bytes", None)
        if cap:
            return int(cap)
    except Exception:
        pass
    return 64 * 1024 * 1024  # conservative (v7x-sized) fallback


def _pick_time_tile(T, Cin, H, Hp, ks, LEAD, in_isz, cdt_isz, out_isz, budget):
    """Largest time tile (rows) whose VMEM footprint fits `budget` bytes.

    Accounts for lane padding (last dim -> 128 lanes in VMEM), double-buffered
    input/output blocks, both scratch slabs and the f32 dot-result/epilogue
    intermediates (review fix for v7x's 64 MiB VMEM)."""
    LANE = 128
    cin_l = _round_up(Cin, LANE)
    kcin_l = _round_up(ks * Cin, LANE)
    h_l = _round_up(H, LANE)
    per_row = (2 * cin_l * in_isz          # x tile (double-buffered)
               + 2 * h_l * out_isz         # out tile (double-buffered, lane-padded)
               + cin_l * cdt_isz           # [halo; tile] slab scratch
               + kcin_l * cdt_isz          # im2col scratch
               + 2 * Hp * 4)               # f32 dot result + epilogue temporaries
    fixed = (2 * _round_up(ks * Cin, 8) * Hp * cdt_isz   # weights (double-buffered)
             + 2 * 8 * Hp * 4                            # bias (double-buffered)
             + 2 * LEAD * cin_l * in_isz                 # halo block (double-buffered)
             + (1 << 20))                                # misc headroom
    avail = max(budget - fixed, per_row * 8)
    tt = int(avail // per_row)
    tt = min(tt, 4096)   # v5e/v6e (128 MiB) reach this cap; v7x is budget-bound
    tt -= tt % 8
    tt = max(tt, 8, LEAD)
    return T if tt >= T else tt


def causal_cn_operator(x, weight, bias, ks, compute_dtype=None, out_dtype=None,
                       time_tile=None):
    """Causal Conv1d + ReLU matching CausalCNOperator.forward.

    x: (B, T, Cin); weight: (H, Cin, ks) [PyTorch Conv1d layout]; bias: (H,).
    Returns (B, T, H) in `out_dtype` (default x.dtype).  `compute_dtype`
    (e.g. bf16) lowers matmul-input precision while keeping f32 accumulation.
    """
    B, T, Cin = x.shape
    H = weight.shape[0]
    ps = ks - 1
    assert ks >= 2, "ks=1 degenerates to a pointwise matmul"

    out_dt = np.dtype(out_dtype) if out_dtype is not None else np.dtype(x.dtype)
    cdt = np.dtype(compute_dtype) if compute_dtype is not None else np.dtype(x.dtype)
    in_isz = np.dtype(x.dtype).itemsize
    out_isz = out_dt.itemsize
    cdt_isz = cdt.itemsize

    Hp = _round_up(H, 128)     # lane-regular matmul RHS only; never stored
    LEAD = _round_up(ps, 8)

    # Generation-aware VMEM limit (v7x: 64 MiB; v5e/v6e: 128 MiB) & time tile.
    vmem_cap = _vmem_capacity_bytes()
    vmem_limit = min(vmem_cap * 3 // 4, 96 * 1024 * 1024)
    if time_tile is not None:
        TT = int(time_tile)
    else:
        TT = _pick_time_tile(T, Cin, H, Hp, ks, LEAD, in_isz, cdt_isz, out_isz,
                             int(vmem_limit * 0.85))
    if TT >= T:
        TT = T
    else:
        TT = max(8, LEAD, TT - (TT % 8))   # keep (8, ·) alignment when tiling
    nt = pl.cdiv(T, TT)

    # im2col weights: W2[k*Cin + c, h] = weight[h, c, k]; pad H -> Hp.
    w = jnp.transpose(weight, (2, 1, 0)).reshape(ks * Cin, H).astype(cdt)
    w = jnp.pad(w, ((0, 0), (0, Hp - H)))
    b = jnp.pad(bias.astype(jnp.float32), (0, Hp - H)).reshape(1, Hp)

    # Per-tile causal halo (B, nt, LEAD, Cin): last ps rows of each entry are
    # x[b, i*TT-ps : i*TT] (zeros for tile 0).  Built with an affine
    # pad+reshape — no gather, negligible HBM traffic.
    if nt == 1:
        halos = jnp.zeros((B, 1, LEAD, Cin), dtype=x.dtype)
    else:
        x_pad = jnp.pad(x, ((0, 0), (LEAD, nt * TT - T), (0, 0)))
        halos = x_pad[:, :nt * TT].reshape(B, nt, TT, Cin)[:, :, :LEAD]

    flops = 2 * B * T * (ks * Cin) * Hp
    bytes_accessed = (x.size * in_isz + halos.size * in_isz
                      + w.size * cdt_isz + b.size * 4
                      + B * T * H * out_isz)

    out = pl.pallas_call(
        _causal_conv_kernel,
        out_shape=jax.ShapeDtypeStruct((B, T, H), out_dt),
        grid_spec=pltpu.PrefetchScalarGridSpec(
            num_scalar_prefetch=0,
            grid=(B, nt),
            in_specs=[
                pl.BlockSpec((1, TT, Cin), lambda b_, t_: (b_, t_, 0)),
                pl.BlockSpec((1, 1, LEAD, Cin), lambda b_, t_: (b_, t_, 0, 0)),
                pl.BlockSpec((ks * Cin, Hp), lambda b_, t_: (0, 0)),
                pl.BlockSpec((1, Hp), lambda b_, t_: (0, 0)),
            ],
            out_specs=pl.BlockSpec((1, TT, H), lambda b_, t_: (b_, t_, 0)),
            scratch_shapes=[
                pltpu.VMEM((LEAD + TT, Cin), cdt),     # [halo ; tile] slab
                pltpu.VMEM((TT, ks * Cin), cdt),       # im2col LHS
            ],
        ),
        compiler_params=pltpu.CompilerParams(
            dimension_semantics=("parallel", "parallel"),
            vmem_limit_bytes=int(vmem_limit),
        ),
        cost_estimate=pl.CostEstimate(flops=int(flops), transcendentals=0,
                                      bytes_accessed=int(bytes_accessed)),
    )(x, halos, w, b)
    return out


def _reference(x, weight, bias, ks):
    """float64 numpy ground truth matching the PyTorch forward."""
    x = np.asarray(x, np.float64)
    w = np.asarray(weight, np.float64)
    b = np.asarray(bias, np.float64)
    ps = ks - 1
    B, T, Cin = x.shape
    x_pad = np.pad(x, ((0, 0), (ps, 0), (0, 0)))
    out = np.zeros((B, T, w.shape[0]), np.float64)
    for k in range(ks):
        out += np.einsum('btc,hc->bth', x_pad[:, k:k + T, :], w[:, :, k])
    out += b[None, None, :]
    return np.maximum(out, 0.0)


if __name__ == "__main__":
    B, T, Cin, H, ks = 2, 8, 4, 32, 3

    key = jax.random.PRNGKey(0)
    kx, kw, kb = jax.random.split(key, 3)

    x = jax.random.normal(kx, (B, T, Cin), dtype=jnp.float32)
    # Deterministic Conv1d-style init: U(-bound, bound), bound = 1/sqrt(Cin*ks)
    bound = 1.0 / np.sqrt(Cin * ks)
    weight = jax.random.uniform(kw, (H, Cin, ks), minval=-bound, maxval=bound,
                                dtype=jnp.float32)
    bias = jax.random.uniform(kb, (H,), minval=-bound, maxval=bound,
                              dtype=jnp.float32)

    # Single-tile path (T fits one time tile).
    fwd = jax.jit(functools.partial(causal_cn_operator, ks=ks))
    out = jax.block_until_ready(fwd(x, weight, bias))
    assert out.shape == (B, T, H)
    np.testing.assert_allclose(np.asarray(out), _reference(x, weight, bias, ks),
                               atol=1e-4, rtol=1e-4)

    # Multi-tile + ragged-T path (forced small time tile): T=20, TT=8 -> nt=3.
    T2 = 20
    x2 = jax.random.normal(jax.random.PRNGKey(1), (B, T2, Cin), dtype=jnp.float32)
    fwd2 = jax.jit(functools.partial(causal_cn_operator, ks=ks, time_tile=8))
    out2 = jax.block_until_ready(fwd2(x2, weight, bias))
    assert out2.shape == (B, T2, H)
    np.testing.assert_allclose(np.asarray(out2), _reference(x2, weight, bias, ks),
                               atol=1e-4, rtol=1e-4)

    print("KERNEL_OK")
</pallas_src>

<mosaic_0001>
module attributes {stable_mosaic.version = 11 : i64} {
  func.func @_causal_conv_kernel(%arg0: i32, %arg1: i32, %arg2: memref<1x8x4xf32, #tpu.memory_space<vmem>>, %arg3: memref<1x1x8x4xf32, #tpu.memory_space<vmem>>, %arg4: memref<12x128xf32, #tpu.memory_space<vmem>>, %arg5: memref<1x128xf32, #tpu.memory_space<vmem>>, %arg6: memref<1x8x32xf32, #tpu.memory_space<vmem>>, %arg7: memref<16x4xf32, #tpu.memory_space<vmem>>, %arg8: memref<8x12xf32, #tpu.memory_space<vmem>>) attributes {dimension_semantics = [#tpu.dimension_semantics<parallel>, #tpu.dimension_semantics<parallel>], iteration_bounds = array<i64: 2, 1>, scalar_prefetch = 0 : i64, scratch_operands = 2 : i64, tpu.core_type = #tpu.core_type<tc>, window_params = [{transform_indices = @transform_0, window_bounds = array<i64: 1, 8, 4>}, {transform_indices = @transform_1, window_bounds = array<i64: 1, 1, 8, 4>}, {pipeline_mode = #tpu.pipeline_mode<synchronous>, transform_indices = @transform_2, window_bounds = array<i64: 12, 128>}, {pipeline_mode = #tpu.pipeline_mode<synchronous>, transform_indices = @transform_3, window_bounds = array<i64: 1, 128>}, {transform_indices = @transform_4, window_bounds = array<i64: 1, 8, 32>}]} {
    %c0 = arith.constant 0 : index
    %c0_0 = arith.constant 0 : index
    %c0_1 = arith.constant 0 : index
    %c0_2 = arith.constant 0 : index
    %0 = vector.load %arg3[%c0, %c0_0, %c0_1, %c0_2] : memref<1x1x8x4xf32, #tpu.memory_space<vmem>>, vector<1x1x8x4xf32>
    %1 = vector.shape_cast %0 : vector<1x1x8x4xf32> to vector<8x4xf32>
    %c0_3 = arith.constant 0 : index
    %c0_4 = arith.constant 0 : index
    %2 = vector.load %arg7[%c0_3, %c0_4] : memref<16x4xf32, #tpu.memory_space<vmem>>, vector<8x4xf32>
    tpu.vector_store %arg7[%c0_3, %c0_4], %1 {strides = array<i32>} : memref<16x4xf32, #tpu.memory_space<vmem>>, vector<8x4xf32>,
    %c0_5 = arith.constant 0 : index
    %c0_6 = arith.constant 0 : index
    %c0_7 = arith.constant 0 : index
    %3 = vector.load %arg2[%c0_5, %c0_6, %c0_7] : memref<1x8x4xf32, #tpu.memory_space<vmem>>, vector<1x8x4xf32>
    %4 = vector.shape_cast %3 : vector<1x8x4xf32> to vector<8x4xf32>
    %c8 = arith.constant 8 : index
    %c0_8 = arith.constant 0 : index
    %5 = vector.load %arg7[%c8, %c0_8] : memref<16x4xf32, #tpu.memory_space<vmem>>, vector<8x4xf32>
    tpu.vector_store %arg7[%c8, %c0_8], %4 {strides = array<i32>} : memref<16x4xf32, #tpu.memory_space<vmem>>, vector<8x4xf32>,
    %c6 = arith.constant 6 : index
    %c0_9 = arith.constant 0 : index
    %6 = vector.load %arg7[%c6, %c0_9] : memref<16x4xf32, #tpu.memory_space<vmem>>, vector<8x4xf32>
    %c0_10 = arith.constant 0 : index
    %c0_11 = arith.constant 0 : index
    %7 = vector.load %arg8[%c0_10, %c0_11] : memref<8x12xf32, #tpu.memory_space<vmem>>, vector<8x4xf32>
    tpu.vector_store %arg8[%c0_10, %c0_11], %6 {strides = array<i32>} : memref<8x12xf32, #tpu.memory_space<vmem>>, vector<8x4xf32>,
    %c7 = arith.constant 7 : index
    %c0_12 = arith.constant 0 : index
    %8 = vector.load %arg7[%c7, %c0_12] : memref<16x4xf32, #tpu.memory_space<vmem>>, vector<8x4xf32>
    %c0_13 = arith.constant 0 : index
    %c4 = arith.constant 4 : index
    %9 = vector.load %arg8[%c0_13, %c4] : memref<8x12xf32, #tpu.memory_space<vmem>>, vector<8x4xf32>
    tpu.vector_store %arg8[%c0_13, %c4], %8 {strides = array<i32>} : memref<8x12xf32, #tpu.memory_space<vmem>>, vector<8x4xf32>,
    %c8_14 = arith.constant 8 : index
    %c0_15 = arith.constant 0 : index
    %10 = vector.load %arg7[%c8_14, %c0_15] : memref<16x4xf32, #tpu.memory_space<vmem>>, vector<8x4xf32>
    %c0_16 = arith.constant 0 : index
    %c8_17 = arith.constant 8 : index
    %11 = vector.load %arg8[%c0_16, %c8_17] : memref<8x12xf32, #tpu.memory_space<vmem>>, vector<8x4xf32>
    tpu.vector_store %arg8[%c0_16, %c8_17], %10 {strides = array<i32>} : memref<8x12xf32, #tpu.memory_space<vmem>>, vector<8x4xf32>,
    %c0_18 = arith.constant 0 : index
    %c0_19 = arith.constant 0 : index
    %12 = vector.load %arg8[%c0_18, %c0_19] : memref<8x12xf32, #tpu.memory_space<vmem>>, vector<8x12xf32>
    %c0_20 = arith.constant 0 : index
    %c0_21 = arith.constant 0 : index
    %13 = vector.load %arg4[%c0_20, %c0_21] : memref<12x128xf32, #tpu.memory_space<vmem>>, vector<12x128xf32>
    %cst = arith.constant dense<0.000000e+00> : vector<8x128xf32>
    %14 = tpu.matmul %12, %13, %cst {dimension_numbers = #tpu.dot_dimension_numbers<[1], [0], [0], [1], [0, 0, 1, 1], [], []>} : vector<8x12xf32>, vector<12x128xf32>, vector<8x128xf32> -> vector<8x128xf32>
    %c0_22 = arith.constant 0 : index
    %c0_23 = arith.constant 0 : index
    %15 = vector.load %arg5[%c0_22, %c0_23] : memref<1x128xf32, #tpu.memory_space<vmem>>, vector<1x128xf32>
    %16 = vector.broadcast %15 : vector<1x128xf32> to vector<8x128xf32>
    %17 = arith.addf %14, %16 : vector<8x128xf32>
    %cst_24 = arith.constant 0.000000e+00 : f32
    %18 = vector.broadcast %cst_24 : f32 to vector<8x128xf32>
    %19 = arith.maximumf %17, %18 : vector<8x128xf32>
    %20 = vector.extract_strided_slice %19 {offsets = [0, 0], sizes = [8, 32], strides = [1, 1]} : vector<8x128xf32> to vector<8x32xf32>
    %c0_25 = arith.constant 0 : index
    %c0_26 = arith.constant 0 : index
    %c0_27 = arith.constant 0 : index
    %21 = vector.load %arg6[%c0_25, %c0_26, %c0_27] : memref<1x8x32xf32, #tpu.memory_space<vmem>>, vector<1x8x32xf32>
    %22 = vector.shape_cast %21 : vector<1x8x32xf32> to vector<8x32xf32>
    %23 = vector.shape_cast %20 : vector<8x32xf32> to vector<1x8x32xf32>
    tpu.vector_store %arg6[%c0_25, %c0_26, %c0_27], %23 {strides = array<i32>} : memref<1x8x32xf32, #tpu.memory_space<vmem>>, vector<1x8x32xf32>,
    return
  }
  func.func @transform_0(%arg0: i32, %arg1: i32) -> (i32, i32, i32) {
    %c0_i32 = arith.constant 0 : i32
    %c0_i32_0 = arith.constant 0 : i32
    return %arg0, %arg1, %c0_i32 : i32, i32, i32
  }
  func.func @transform_1(%arg0: i32, %arg1: i32) -> (i32, i32, i32, i32) {
    %c0_i32 = arith.constant 0 : i32
    %c0_i32_0 = arith.constant 0 : i32
    %c0_i32_1 = arith.constant 0 : i32
    return %arg0, %arg1, %c0_i32, %c0_i32_0 : i32, i32, i32, i32
  }
  func.func @transform_2(%arg0: i32, %arg1: i32) -> (i32, i32) {
    %c0_i32 = arith.constant 0 : i32
    %c0_i32_0 = arith.constant 0 : i32
    %c0_i32_1 = arith.constant 0 : i32
    return %c0_i32, %c0_i32_0 : i32, i32
  }
  func.func @transform_3(%arg0: i32, %arg1: i32) -> (i32, i32) {
    %c0_i32 = arith.constant 0 : i32
    %c0_i32_0 = arith.constant 0 : i32
    %c0_i32_1 = arith.constant 0 : i32
    return %c0_i32, %c0_i32_0 : i32, i32
  }
  func.func @transform_4(%arg0: i32, %arg1: i32) -> (i32, i32, i32) {
    %c0_i32 = arith.constant 0 : i32
    %c0_i32_0 = arith.constant 0 : i32
    return %arg0, %arg1, %c0_i32 : i32, i32, i32
  }
}

</mosaic_0001>

<bundles_post_ra>
// kernel: causal_cn_operator.1
= control target key start
LH: loop header
LB: loop body
LE: loop exit
PB: predicated region body
PF: predicated region fallthrough
CT: control target
= control target key end

     0   :  { %9 = vsyncpa [#allocation5], 0  ;;  %s696_s0 = inlined_call_operand.vmem [shape: f32[2,8,4], index: 0, kind: input, shape index: {}]   ;;  %s697_s1 = inlined_call_operand.vmem [shape: f32[2,1,8,4], index: 1, kind: input, shape index: {}]   ;;  %s698_s2 = inlined_call_operand.vmem [shape: f32[12,128], index: 2, kind: input, shape index: {}]   ;;  %s699_s3 = inlined_call_operand.vmem [shape: f32[1,128], index: 3, kind: input, shape index: {}]   ;;  %s700_s4 = inlined_call_operand.hbm [shape: f32[2,8,32], index: 4, kind: output, shape index: {}]  }
   0x1   :  { %11 = vsyncpa [#allocation5 + $0x1], 0  ;;  %s587_s15 = smov 0   ;;  %s589_s16 = smov 0  }
   0x2   :  { %s591_s17 = smov 0   ;;  %s593_s18 = smov 0  }
   0x3   :  { %s595_s19 = smov 0   ;;  %s597_s20 = smov 0  }
   0x4 LB: > { %s408_s21 = sadd.s32 4294967295, %s558_s20   ;;  %s409_s22 = sadd.s32 4294967294, %s558_s20   ;;  %s558_s20 = sphi %s597_s20, %s17_s20   ;;  %s554_s19 = sphi %s595_s19, %s707_s19   ;;  %s550_s18 = sphi %s593_s18, %s706_s18   ;;  %s546_s17 = sphi %s591_s17, %s705_s17   ;;  %s542_s16 = sphi %s589_s16, %s704_s16   ;;  %s538_s15 = sphi %s587_s15, %s703_s15  }
   0x5   : > { %s29_s23 = sadd.s32 1, %s554_s19  ;;  %s136_s24 = sadd.s32 1, %s546_s17 }
   0x6   : > { %p31_p0 = scmp.ge.s32.totalorder %s29_s23, 2  ;;  %p146_p1 = scmp.ne.s32.totalorder %s546_s17, %s542_s16 }
   0x7   : > { %p147_p2 = scmp.eq.s32.totalorder %s408_s21, 1  ;;  %p152_p3 = scmp.ne.s32.totalorder %s542_s16, %s538_s15 }
   0x8   : > { %s709_s23 = smov (%p31_p0, %s29_s23), 0  ;;  %p153_p5 = scmp.eq.s32.totalorder %s409_s22, 1 }
   0x9   : > { %p627_p4 = por %p147_p2, %p146_p1  ;;  %s131_s26 = ssub.s32 %s554_s19, %s709_s23 }
   0xa   : > { %p412_p6 = scmp.ge.s32.totalorder %s558_s20, 1  ;;  %p134_p7 = scmp.eq.s32.totalorder %s131_s26, 0 }
   0xb   : > { %p634_p8 = por %p153_p5, %p152_p3  ;;  %p197_p9 = scmp.lt.s32.totalorder %s558_s20, 3 }
   0xc   : > { %s640_s28 = scalar_select %p134_p7, %s546_s17, %s136_s24  }
   0xd   : > { %p198_p10 = pnand %p412_p6, %p197_p9 }
   0xe   : > { %p232_p11 = scmp.lt.s32.totalorder (!%p198_p10), %s550_s18, 1  ;;  %s560_s11 = smov (!%p198_p10), 4  }
   0xf   : > { %201 = sbr.rel (%p198_p10) target bundleno = 298 (0x12a), region = 36  ;;  %s561_s12 = smov (!%p198_p10), 8  }
  0x10   : > { %s229_s24 = sand.u32 (!%p198_p10), 1, %s542_s16   ;;  %s500_s22 = scalar_lea.hbm (!%p198_p10), %s700_s4, 16 }
  0x11   : > { %s413_s26 = sshll.u32 (!%p198_p10), %s229_s24, 3 }
  0x12   : > { %s231_s9 = scalar_lea.vmem (!%p198_p10), [#allocation4], %s413_s26 }
  0x14   : > { %s233_s29 = scalar_select %p232_p11, %s550_s18, 1  ;;  %vm247_vm0 = vcmask 31744   ;;  %v269_v5 = vld [vmem:[%s698_s2 + $0x8] sm:$0xf]  ;;  %vm278_vm1 = vcmask 1043456   ;;  %v268_v6 = vld [vmem:[%s698_s2] sm:$0xff] }
  0x15   : > { %416 = vmatpush.msk.msra.mxu0 %vm278_vm1, %v269_v5  ;;  %vm258_vm2 = vcmask 64544   ;;  %vm265_vm3 = vcmask 97344   ;;  %vm274_vm4 = vcmask 97280   ;;  %v479_v10 = vld [vmem:[%s699_s3] ss:$0 sm:$0xff]  ;;  %vm303_vm5 = vcmask 261120  }
  0x16   : > { %s414_s30 = sshll.u32 %s233_s29, 3  ;;  %s419_s29 = sshll.u32 %s550_s18, 3 }
  0x17   : > { %s238_s7 = scalar_lea.vmem %s696_s0, %s414_s30  ;;  %s245_s10 = scalar_lea.vmem %s697_s1, %s414_s30  ;;  %297 = vmatpush.msra.mxu0 %v268_v6 }
  0x18   : > { %v246_v0 = vld [vmem:[%s245_s10] sm:$0xff]  ;;  %s317_s8 = scalar_lea.hbm %s700_s4, %s419_s29  ;;  %s319_s10 = sshll.u32 %s231_s9, 4  ;;  %s320_s10 = int_to_ptr.vmem [resolvable:$true] %s319_s10 }
  0x19   : > { %v249_v1 = vld [vmem:[%s238_s7] sm:$0xff]  ;;  %248 = vst.msk [vmem:[#allocation2] sm:$0xff] %vm247_vm0, %v246_v0  ;;  %s306_s18 = scalar_lea.sflag [#allocation5], %s229_s24 }
  0x1a   : > { %250 = vst.msk [vmem:[#allocation2 + $0x8] sm:$0xff] %vm247_vm0, %v249_v1 }
  0x21   : > { %v253_v2 = vld [vmem:[#allocation2 + $0x7] sm:$0xff] }
  0x22   : > { %255 = vrot.lane.b32.xlu0 %v253_v2, %s560_s11  ;;  %v260_v3 = vld [vmem:[#allocation2 + $0x8] sm:$0xff]  ;;  %s321_s11 = sshll.u32 %s317_s8, 4  ;;  %s322_s11 = int_to_ptr.hbm [resolvable:$true] %s321_s11 }
  0x23   : > { %v251_v4 = vld [vmem:[#allocation2 + $0x6] sm:$0xff] }
  0x24   : > { %252 = vst.msk [vmem:[#allocation3] sm:$0xff] %vm247_vm0, %v251_v4 }
  0x2a   : > { %262 = vrot.lane.b32.xlu0 %v260_v3, %s561_s12  ;;  %s494_s12 = sshra.s32 %s322_s11, 4  ;;  %s495_s12 = int_to_ptr.hbm [resolvable:$true] %s494_s12 }
  0x2b   : > { %s496_s13 = scalar_lea.hbm %s495_s12, 8  ;;  %p501_p1 = scmp.lt.s32.totalorder %s495_s12, %s700_s4 }
  0x2c   : > { %p497_p12 = scmp.ne.s32.totalorder %s495_s12, %s496_s13  ;;  %p502_p2 = scmp.lt.s32.totalorder %s500_s22, %s496_s13 }
  0x2e   : > { %p498_p13 = pnand %p497_p12, %p627_p4  ;;  %p503_p3 = por %p502_p2, %p501_p1 }
  0x30   : > { %p499_p0 = pneg %p498_p13 }
  0x32   : > { %p504_p5 = pnand %p503_p3, %p499_p0 }
  0x94   : > { %v256_v7 = vpop.permute.xlu0 %255 }
  0x95   : > { %259 = vst.msk [vmem:[#allocation3] sm:$0xff] %vm258_vm2, %v256_v7 }
  0x9c   : > { %v263_v8 = vpop.permute.xlu0 %262 }
  0x9d   : > { %266 = vst.msk [vmem:[#allocation3] sm:$0xff] %vm265_vm3, %v263_v8 }
  0xa4   : > { %v267_v9 = vld [vmem:[#allocation3] sm:$0xff] }
  0xa5   : > { %417 = vmatmul.msk.f32.vlgmr.msra.gmra.mxu0 %vm274_vm4, %v267_v9 }
 0x122   : > { %v299_v11 = vpop.f32.mrf.mxu0 }
 0x123   : > { %v300_v12 = vadd.f32 %v479_v10, %v299_v11 }
 0x125   : > { %v302_v13 = vmax.f32 %v300_v12, 0.0 }
 0x127   : > { %304 = vst.msk [vmem:[%s231_s9] sm:$0xff] %vm303_vm5, %v302_v13 }
 0x128   : > { %507 = shalt.err (!%p504_p5)
}
 0x129   : > { %422 = dma.vmem_to_hbm [thread:$0]  (%p627_p4), %s320_s10, 128, %s322_s11, %s306_s18  }
 0x12a PF: > { %p428_p6 = scmp.ge.s32.totalorder %s558_s20, 2  ;;  %s333_s24 = sand.u32 1, %s538_s15  }
 0x12b   : > { %s334_s30 = scalar_lea.sflag [#allocation5], %s333_s24 }
 0x12c   : > { %p425_p7 = pnand %p428_p6, %p634_p8 }
 0x12e   : > { %p426_p9 = pneg %p425_p7 }
 0x130   : > { %533 = dma.done.wait (%p426_p9), %s334_s30, 128  }
 0x131   : > { %535 = vsyncadd (%p426_p9), %s334_s30, 4294967168  ;;  %s17_s20 = sadd.s32 1, %s558_s20   ;;  %s703_s15 = smov %s542_s16 }
 0x132   : > { %p14_p10 = scmp.ge.s32.totalorder %s17_s20, 4   ;;  %s704_s16 = smov %s546_s17 }
 0x133   : > { %s705_s17 = smov %s640_s28  ;;  %s706_s18 = smov %s554_s19 }
 0x134   : > { %s707_s19 = smov %s709_s23  ;;  %16 = sbr.rel (!%p14_p10) target bundleno = 4 (0x4), region = 74 }
 0x139   :  { %340 = vsyncpa [#allocation5], 1 }
 0x13a   :  { %342 = vsyncpa [#allocation5 + $0x1], 1 }

</bundles_post_ra>
